<compile_context>
chip_gen: v5e
topology: v5e:2x2
jax: 0.10.0
libtpu: 0.0.40
codegen_flags: <defaults>
</compile_context>

<pallas_src>
import math

import jax
import jax.numpy as jnp
from jax.experimental import pallas as pl
from jax.experimental.pallas import tpu as pltpu

IN_FEATURES = 48 * 4 * 4   # 768
HIDDEN = 100
OUT = 2

HID_PAD = 128              # lane-dense hidden width
OUT_PAD = 128              # lane-dense output width
TM_MAX = 1024              # row tile (VMEM-safe on v7x, good DMA overlap)
NEG_BIG = -1e30            # padded-logit bias (exp -> 0, no -inf arithmetic)


def _domain_classifier_kernel(x_ref, w1_ref, b1_ref, w2_ref, b2_ref, o_ref):
    """fc1(bf16 MXU) -> relu -> fc2 -> log_softmax on one (TM, .) row tile."""
    # fc1 on the MXU: bf16 inputs, f32 accumulation.
    h = jnp.dot(x_ref[...], w1_ref[...], preferred_element_type=jnp.float32)
    h = jnp.maximum(h + b1_ref[...], 0.0)                      # (TM, 128) f32

    # fc2 (tiny, resident f32 weights); padded columns carry a -1e30 bias.
    logits = jnp.dot(h, w2_ref[...], preferred_element_type=jnp.float32)
    logits = logits + b2_ref[...]                              # (TM, 128)

    # Numerically stable log_softmax; exp of padded columns underflows to 0,
    # so the first OUT columns match an unpadded 2-way log_softmax exactly.
    m = jnp.max(logits, axis=-1, keepdims=True)
    shifted = logits - m
    lse = jnp.log(jnp.sum(jnp.exp(shifted), axis=-1, keepdims=True))
    o_ref[...] = (shifted - lse).astype(o_ref.dtype)


def _prep_params(w1, b1, w2, b2):
    """Pad to lane-dense shapes; fc1 weight goes to bf16 (MXU-native)."""
    w1_p = jnp.zeros((IN_FEATURES, HID_PAD), jnp.bfloat16)
    w1_p = w1_p.at[:, :HIDDEN].set(w1.astype(jnp.bfloat16))
    b1_p = jnp.zeros((1, HID_PAD), jnp.float32).at[:, :HIDDEN].set(
        b1.astype(jnp.float32))
    w2_p = jnp.zeros((HID_PAD, OUT_PAD), jnp.float32).at[:HIDDEN, :OUT].set(
        w2.astype(jnp.float32))
    b2_p = jnp.full((1, OUT_PAD), NEG_BIG, jnp.float32).at[:, :OUT].set(
        b2.astype(jnp.float32))
    return w1_p, b1_p, w2_p, b2_p


def domain_classifier_forward(x, w1, b1, w2, b2, constant=1.0):
    """Pallas-backed forward.

    x : (N, 768) float32 (already flattened, as the PyTorch caller does)
    w1: (768, 100), b1: (100,)   -- stored pre-transposed (in, out)
    w2: (100, 2),   b2: (2,)
    returns log-probabilities (N, 2).  `constant` is accepted for API parity;
    GradReverse is identity in the forward pass.
    """
    n = x.shape[0]

    # Choose the row tile and pad N so the grid divides evenly.
    n_pad8 = ((n + 7) // 8) * 8
    if n_pad8 <= TM_MAX:
        tm = n_pad8
        n_pad = n_pad8
    else:
        tm = TM_MAX
        n_pad = ((n + TM_MAX - 1) // TM_MAX) * TM_MAX

    # bf16 x halves HBM traffic for the dominant streamed operand.
    x_p = jnp.zeros((n_pad, IN_FEATURES), jnp.bfloat16)
    x_p = x_p.at[:n].set(x.astype(jnp.bfloat16))
    w1_p, b1_p, w2_p, b2_p = _prep_params(w1, b1, w2, b2)

    grid = (n_pad // tm,)
    cost = pl.CostEstimate(
        flops=2 * n_pad * IN_FEATURES * HID_PAD + 2 * n_pad * HID_PAD * OUT_PAD,
        transcendentals=2 * n_pad * OUT_PAD,          # exp + log in softmax
        bytes_accessed=(x_p.size * 2 + n_pad * OUT_PAD * 4
                        + w1_p.size * 2 + b1_p.size * 4
                        + w2_p.size * 4 + b2_p.size * 4),
    )

    out = pl.pallas_call(
        _domain_classifier_kernel,
        out_shape=jax.ShapeDtypeStruct((n_pad, OUT_PAD), jnp.float32),
        grid=grid,
        in_specs=[
            pl.BlockSpec((tm, IN_FEATURES), lambda i: (i, 0)),       # x tile
            pl.BlockSpec((IN_FEATURES, HID_PAD), lambda i: (0, 0)),  # resident
            pl.BlockSpec((1, HID_PAD), lambda i: (0, 0)),            # resident
            pl.BlockSpec((HID_PAD, OUT_PAD), lambda i: (0, 0)),      # resident
            pl.BlockSpec((1, OUT_PAD), lambda i: (0, 0)),            # resident
        ],
        out_specs=pl.BlockSpec((tm, OUT_PAD), lambda i: (i, 0)),
        compiler_params=pltpu.CompilerParams(
            dimension_semantics=("parallel",)),
        cost_estimate=cost,
    )(x_p, w1_p, b1_p, w2_p, b2_p)

    return out[:n, :OUT]


def init_params(key):
    """Deterministic init matching nn.Linear's default (U[-1/sqrt(fan_in), ..])."""
    k1, k2, k3, k4 = jax.random.split(key, 4)
    bound1 = 1.0 / math.sqrt(IN_FEATURES)
    bound2 = 1.0 / math.sqrt(HIDDEN)
    w1 = jax.random.uniform(k1, (IN_FEATURES, HIDDEN), jnp.float32, -bound1, bound1)
    b1 = jax.random.uniform(k2, (HIDDEN,), jnp.float32, -bound1, bound1)
    w2 = jax.random.uniform(k3, (HIDDEN, OUT), jnp.float32, -bound2, bound2)
    b2 = jax.random.uniform(k4, (OUT,), jnp.float32, -bound2, bound2)
    return w1, b1, w2, b2


def _reference_forward_f32(x, w1, b1, w2, b2):
    h = jnp.maximum(x @ w1 + b1, 0.0)
    logits = h @ w2 + b2
    return jax.nn.log_softmax(logits, axis=1)


def _reference_forward_bf16_matched(x, w1, b1, w2, b2):
    """Same math as the kernel (bf16 fc1 inputs, f32 accumulation/elementwise)."""
    h = jnp.dot(x.astype(jnp.bfloat16), w1.astype(jnp.bfloat16),
                preferred_element_type=jnp.float32) + b1
    h = jnp.maximum(h, 0.0)
    logits = h @ w2 + b2
    return jax.nn.log_softmax(logits, axis=1)


if __name__ == "__main__":
    key = jax.random.PRNGKey(0)
    kx, kp = jax.random.split(key)

    batch = 2
    x = jax.random.normal(kx, (batch, IN_FEATURES), jnp.float32)
    w1, b1, w2, b2 = init_params(kp)

    out = domain_classifier_forward(x, w1, b1, w2, b2, constant=0.5)
    out = jax.block_until_ready(out)
    assert out.shape == (batch, OUT)

    ref_bf16 = _reference_forward_bf16_matched(x, w1, b1, w2, b2)
    ref_f32 = _reference_forward_f32(x, w1, b1, w2, b2)
    assert jnp.allclose(out, ref_bf16, atol=1e-4, rtol=1e-4), \
        "mismatch vs bf16-matched reference"
    assert jnp.allclose(out, ref_f32, atol=2e-2, rtol=2e-2), \
        "mismatch vs f32 reference"

    print("KERNEL_OK")
</pallas_src>

<mosaic_0001>
module attributes {stable_mosaic.version = 11 : i64} {
  func.func @_domain_classifier_kernel(%arg0: i32, %arg1: memref<8x768xbf16, #tpu.memory_space<vmem>>, %arg2: memref<768x128xbf16, #tpu.memory_space<vmem>>, %arg3: memref<1x128xf32, #tpu.memory_space<vmem>>, %arg4: memref<128x128xf32, #tpu.memory_space<vmem>>, %arg5: memref<1x128xf32, #tpu.memory_space<vmem>>, %arg6: memref<8x128xf32, #tpu.memory_space<vmem>>) attributes {dimension_semantics = [#tpu.dimension_semantics<parallel>], iteration_bounds = array<i64: 1>, scalar_prefetch = 0 : i64, scratch_operands = 0 : i64, tpu.core_type = #tpu.core_type<tc>, window_params = [{transform_indices = @transform_0, window_bounds = array<i64: 8, 768>}, {pipeline_mode = #tpu.pipeline_mode<synchronous>, transform_indices = @transform_1, window_bounds = array<i64: 768, 128>}, {pipeline_mode = #tpu.pipeline_mode<synchronous>, transform_indices = @transform_2, window_bounds = array<i64: 1, 128>}, {pipeline_mode = #tpu.pipeline_mode<synchronous>, transform_indices = @transform_3, window_bounds = array<i64: 128, 128>}, {pipeline_mode = #tpu.pipeline_mode<synchronous>, transform_indices = @transform_4, window_bounds = array<i64: 1, 128>}, {transform_indices = @transform_5, window_bounds = array<i64: 8, 128>}]} {
    %c0 = arith.constant 0 : index
    %c0_0 = arith.constant 0 : index
    %0 = vector.load %arg1[%c0, %c0_0] : memref<8x768xbf16, #tpu.memory_space<vmem>>, vector<8x768xbf16>
    %c0_1 = arith.constant 0 : index
    %c0_2 = arith.constant 0 : index
    %1 = vector.load %arg2[%c0_1, %c0_2] : memref<768x128xbf16, #tpu.memory_space<vmem>>, vector<768x128xbf16>
    %cst = arith.constant dense<0.000000e+00> : vector<8x128xf32>
    %2 = tpu.matmul %0, %1, %cst {dimension_numbers = #tpu.dot_dimension_numbers<[1], [0], [0], [1], [0, 0, 1, 1], [], []>} : vector<8x768xbf16>, vector<768x128xbf16>, vector<8x128xf32> -> vector<8x128xf32>
    %c0_3 = arith.constant 0 : index
    %c0_4 = arith.constant 0 : index
    %3 = vector.load %arg3[%c0_3, %c0_4] : memref<1x128xf32, #tpu.memory_space<vmem>>, vector<1x128xf32>
    %4 = vector.broadcast %3 : vector<1x128xf32> to vector<8x128xf32>
    %5 = arith.addf %2, %4 : vector<8x128xf32>
    %cst_5 = arith.constant 0.000000e+00 : f32
    %6 = vector.broadcast %cst_5 : f32 to vector<8x128xf32>
    %7 = arith.maximumf %5, %6 : vector<8x128xf32>
    %c0_6 = arith.constant 0 : index
    %c0_7 = arith.constant 0 : index
    %8 = vector.load %arg4[%c0_6, %c0_7] : memref<128x128xf32, #tpu.memory_space<vmem>>, vector<128x128xf32>
    %cst_8 = arith.constant dense<0.000000e+00> : vector<8x128xf32>
    %9 = tpu.matmul %7, %8, %cst_8 {dimension_numbers = #tpu.dot_dimension_numbers<[1], [0], [0], [1], [0, 0, 1, 1], [], []>} : vector<8x128xf32>, vector<128x128xf32>, vector<8x128xf32> -> vector<8x128xf32>
    %c0_9 = arith.constant 0 : index
    %c0_10 = arith.constant 0 : index
    %10 = vector.load %arg5[%c0_9, %c0_10] : memref<1x128xf32, #tpu.memory_space<vmem>>, vector<1x128xf32>
    %11 = vector.broadcast %10 : vector<1x128xf32> to vector<8x128xf32>
    %12 = arith.addf %9, %11 : vector<8x128xf32>
    %cst_11 = arith.constant dense<0xFF800000> : vector<8xf32>
    %13 = vector.multi_reduction <maximumf>, %12, %cst_11 [1] : vector<8x128xf32> to vector<8xf32>
    %14 = vector.shape_cast %13 : vector<8xf32> to vector<8x1xf32>
    %15 = vector.broadcast %14 : vector<8x1xf32> to vector<8x128xf32>
    %16 = arith.subf %12, %15 : vector<8x128xf32>
    %17 = math.exp %16 : vector<8x128xf32>
    %cst_12 = arith.constant dense<0.000000e+00> : vector<8xf32>
    %18 = vector.multi_reduction <add>, %17, %cst_12 [1] : vector<8x128xf32> to vector<8xf32>
    %19 = vector.shape_cast %18 : vector<8xf32> to vector<8x1xf32>
    %20 = math.log %19 : vector<8x1xf32>
    %21 = vector.broadcast %20 : vector<8x1xf32> to vector<8x128xf32>
    %22 = arith.subf %16, %21 : vector<8x128xf32>
    %c0_13 = arith.constant 0 : index
    %c0_14 = arith.constant 0 : index
    %23 = vector.load %arg6[%c0_13, %c0_14] : memref<8x128xf32, #tpu.memory_space<vmem>>, vector<8x128xf32>
    tpu.vector_store %arg6[%c0_13, %c0_14], %22 {strides = array<i32>} : memref<8x128xf32, #tpu.memory_space<vmem>>, vector<8x128xf32>,
    return
  }
  func.func @transform_0(%arg0: i32) -> (i32, i32) {
    %c0_i32 = arith.constant 0 : i32
    %c0_i32_0 = arith.constant 0 : i32
    return %arg0, %c0_i32 : i32, i32
  }
  func.func @transform_1(%arg0: i32) -> (i32, i32) {
    %c0_i32 = arith.constant 0 : i32
    %c0_i32_0 = arith.constant 0 : i32
    %c0_i32_1 = arith.constant 0 : i32
    return %c0_i32, %c0_i32_0 : i32, i32
  }
  func.func @transform_2(%arg0: i32) -> (i32, i32) {
    %c0_i32 = arith.constant 0 : i32
    %c0_i32_0 = arith.constant 0 : i32
    %c0_i32_1 = arith.constant 0 : i32
    return %c0_i32, %c0_i32_0 : i32, i32
  }
  func.func @transform_3(%arg0: i32) -> (i32, i32) {
    %c0_i32 = arith.constant 0 : i32
    %c0_i32_0 = arith.constant 0 : i32
    %c0_i32_1 = arith.constant 0 : i32
    return %c0_i32, %c0_i32_0 : i32, i32
  }
  func.func @transform_4(%arg0: i32) -> (i32, i32) {
    %c0_i32 = arith.constant 0 : i32
    %c0_i32_0 = arith.constant 0 : i32
    %c0_i32_1 = arith.constant 0 : i32
    return %c0_i32, %c0_i32_0 : i32, i32
  }
  func.func @transform_5(%arg0: i32) -> (i32, i32) {
    %c0_i32 = arith.constant 0 : i32
    %c0_i32_0 = arith.constant 0 : i32
    return %arg0, %c0_i32 : i32, i32
  }
}

</mosaic_0001>

<bundles_post_ra>
// kernel: tpu_custom_call.1
= control target key start
LH: loop header
LB: loop body
LE: loop exit
PB: predicated region body
PF: predicated region fallthrough
CT: control target
= control target key end

     0   :  { %10 = vsyncpa [#allocation3], 0  ;;  %s1038_s0 = inlined_call_operand.hbm [shape: bf16[8,768], index: 0, kind: input, shape index: {}]   ;;  %s1039_s1 = inlined_call_operand.hbm [shape: bf16[768,128], index: 1, kind: input, shape index: {}]   ;;  %s1040_s2 = inlined_call_operand.vmem [shape: f32[1,128], index: 2, kind: input, shape index: {}]   ;;  %s1041_s3 = inlined_call_operand.hbm [shape: f32[128,128], index: 3, kind: input, shape index: {}]   ;;  %s1042_s4 = inlined_call_operand.vmem [shape: f32[1,128], index: 4, kind: input, shape index: {}]   ;;  %s1043_s5 = inlined_call_operand.hbm [shape: f32[8,128], index: 5, kind: output, shape index: {}]  }
   0x1   :  { %11 = vsyncpa [#allocation6], 0  ;;  %s28_s20 = sshll.u32 %s1039_s1, 4  ;;  %s29_s20 = int_to_ptr.hbm [resolvable:$true] %s28_s20 }
   0x2   :  { %12 = vsyncpa [#allocation4], 0  ;;  %s982_s21 = smov [#allocation5]   ;;  %s18_s25 = sshll.u32 %s1038_s0, 4  ;;  %s19_s25 = int_to_ptr.hbm [resolvable:$true] %s18_s25 }
   0x3   :  { %s30_s22 = sshll.u32 %s982_s21, 4  ;;  %s983_s26 = smov 64   ;;  %s31_s22 = int_to_ptr.vmem [resolvable:$true] %s30_s22 }
   0x4   :  { %s984_s27 = smov 4   ;;  %s985_s28 = smov [#allocation2]  }
   0x5   :  { %36 = dma.hbm_to_vmem [thread:$0]  %s29_s20, 6144, %s31_s22, [#allocation6], %s983_s26, %s983_s26, %s984_s27  }
   0x6   :  { %s20_s29 = sshll.u32 %s985_s28, 4  ;;  %s43_s7 = sshll.u32 %s1041_s3, 4  ;;  %s21_s29 = int_to_ptr.vmem [resolvable:$true] %s20_s29  ;;  %s44_s7 = int_to_ptr.hbm [resolvable:$true] %s43_s7 }
   0x7   :  { %23 = dma.hbm_to_vmem [thread:$0]  %s19_s25, 384, %s21_s29, [#allocation3]  }
   0x8   :  { %s986_s1 = smov [#allocation7]   ;;  %s987_s9 = smov 128  }
   0x9   :  { %s45_s8 = sshll.u32 %s986_s1, 4  ;;  %s988_s10 = smov 8   ;;  %s46_s8 = int_to_ptr.vmem [resolvable:$true] %s45_s8 }
   0xa   :  { %51 = dma.hbm_to_vmem [thread:$0]  %s44_s7, 2048, %s46_s8, [#allocation6], %s987_s9, %s987_s9, %s988_s10  }
   0xb   :  { %976 = dma.done.wait [#allocation3], 384  }
   0xc   :  { %977 = vsyncadd [#allocation3], 4294966912 }
   0xd   :  { %978 = dma.done.wait [#allocation6], 8192  }
   0xe   :  { %979 = vsyncadd [#allocation6], 4294959104  ;;  %v825_v0 = vld [vmem:[#allocation5 + $0x38] sm:$0xff]  ;;  %v824_v2 = vld [vmem:[#allocation5 + $0x30] sm:$0xff]  ;;  %s615_s16 = sshll.u32 %s1043_s5, 4  ;;  %s616_s16 = int_to_ptr.hbm [resolvable:$true] %s615_s16 }
   0xf   :  { %v833_v1 = vld [vmem:[#allocation5 + $0x78] sm:$0xff]  ;;  %478 = vmatpush.bf16.msra.mxu0 %v825_v0  ;;  %v832_v3 = vld [vmem:[#allocation5 + $0x70] sm:$0xff]  ;;  %v823_v8 = vld [vmem:[#allocation5 + $0x28] sm:$0xff] }
  0x10   :  { %491 = vmatpush.bf16.msra.mxu1 %v833_v1  ;;  %v841_v4 = vld [vmem:[#allocation5 + $0xb8] sm:$0xff]  ;;  %v840_v6 = vld [vmem:[#allocation5 + $0xb0] sm:$0xff]  ;;  %v831_v9 = vld [vmem:[#allocation5 + $0x68] sm:$0xff] }
  0x11   :  { %v849_v5 = vld [vmem:[#allocation5 + $0xf8] sm:$0xff]  ;;  %504 = vmatpush.bf16.msra.mxu2 %v841_v4  ;;  %v848_v7 = vld [vmem:[#allocation5 + $0xf0] sm:$0xff]  ;;  %v839_v10 = vld [vmem:[#allocation5 + $0xa8] sm:$0xff] }
  0x12   :  { %517 = vmatpush.bf16.msra.mxu3 %v849_v5  ;;  %v847_v11 = vld [vmem:[#allocation5 + $0xe8] sm:$0xff]  ;;  %v822_v12 = vld [vmem:[#allocation5 + $0x20] sm:$0xff]  ;;  %v821_v16 = vld [vmem:[#allocation5 + $0x18] sm:$0xff] }
  0x13   :  { %479 = vmatpush.bf16.msra.mxu0 %v824_v2  ;;  %v830_v13 = vld [vmem:[#allocation5 + $0x60] sm:$0xff]  ;;  %v829_v17 = vld [vmem:[#allocation5 + $0x58] sm:$0xff]  ;;  %v820_v20 = vld [vmem:[#allocation5 + $0x10] sm:$0xff] }
  0x14   :  { %492 = vmatpush.bf16.msra.mxu1 %v832_v3  ;;  %v838_v14 = vld [vmem:[#allocation5 + $0xa0] sm:$0xff]  ;;  %v837_v18 = vld [vmem:[#allocation5 + $0x98] sm:$0xff]  ;;  %v828_v21 = vld [vmem:[#allocation5 + $0x50] sm:$0xff] }
  0x15   :  { %505 = vmatpush.bf16.msra.mxu2 %v840_v6  ;;  %v846_v15 = vld [vmem:[#allocation5 + $0xe0] sm:$0xff]  ;;  %v845_v19 = vld [vmem:[#allocation5 + $0xd8] sm:$0xff]  ;;  %v836_v22 = vld [vmem:[#allocation5 + $0x90] sm:$0xff] }
  0x16   :  { %518 = vmatpush.bf16.msra.mxu3 %v848_v7  ;;  %v844_v23 = vld [vmem:[#allocation5 + $0xd0] sm:$0xff]  ;;  %v819_v24 = vld [vmem:[#allocation5 + $0x8] sm:$0xff]  ;;  %v818_v32 = vld [vmem:[#allocation5] sm:$0xff] }
  0x17   :  { %480 = vmatpush.bf16.msra.mxu0 %v823_v8  ;;  %v827_v25 = vld [vmem:[#allocation5 + $0x48] sm:$0xff]  ;;  %v67_v31 = vld [vmem:[#allocation2 + $0x8] sm:$0xff]  ;;  %v826_v33 = vld [vmem:[#allocation5 + $0x40] sm:$0xff] }
  0x18   :  { %493 = vmatpush.bf16.msra.mxu1 %v831_v9  ;;  %v66_v26 = vld [vmem:[#allocation2] sm:$0xff]  ;;  %v857_v34 = vld [vmem:[#allocation5 + $0x138] sm:$0xff]  ;;  %v834_v36 = vld [vmem:[#allocation5 + $0x80] sm:$0xff]  ;;  %v174_v37 = vunpack.c.l.b16 %v67_v31  ;;  %v175_v40 = vunpack.c.h.b16 %v67_v31 }
  0x19   :  { %506 = vmatpush.bf16.msra.mxu2 %v839_v10  ;;  %v835_v27 = vld [vmem:[#allocation5 + $0x88] sm:$0xff]  ;;  %v172_v28 = vunpack.c.l.b16 %v66_v26  ;;  %v173_v30 = vunpack.c.h.b16 %v66_v26  ;;  %v865_v35 = vld [vmem:[#allocation5 + $0x178] sm:$0xff]  ;;  %v842_v41 = vld [vmem:[#allocation5 + $0xc0] sm:$0xff] }
  0x1a   :  { %519 = vmatpush.bf16.msra.mxu3 %v847_v11  ;;  %v843_v29 = vld [vmem:[#allocation5 + $0xc8] sm:$0xff]  ;;  %v856_v42 = vld [vmem:[#allocation5 + $0x130] sm:$0xff]  ;;  %v180_v44 = vpack.c.b16 %v174_v37, %v174_v37  ;;  %v181_v45 = vpack.c.b16 %v175_v40, %v175_v40  ;;  %v854_v48 = vld [vmem:[#allocation5 + $0x120] sm:$0xff] }
  0x1b   :  { %481 = vmatpush.bf16.msra.mxu0 %v822_v12  ;;  %v178_v38 = vpack.c.b16 %v172_v28, %v172_v28  ;;  %v179_v39 = vpack.c.b16 %v173_v30, %v173_v30  ;;  %v864_v43 = vld [vmem:[#allocation5 + $0x170] sm:$0xff]  ;;  %v855_v46 = vld [vmem:[#allocation5 + $0x128] sm:$0xff]  ;;  %v862_v49 = vld [vmem:[#allocation5 + $0x160] sm:$0xff] }
  0x1c   :  { %494 = vmatpush.bf16.msra.mxu1 %v830_v13  ;;  %v863_v47 = vld [vmem:[#allocation5 + $0x168] sm:$0xff]  ;;  %v853_v50 = vld [vmem:[#allocation5 + $0x118] sm:$0xff]  ;;  %v852_v52 = vld [vmem:[#allocation5 + $0x110] sm:$0xff] }
  0x1d   :  { %507 = vmatpush.bf16.msra.mxu2 %v838_v14  ;;  %v861_v51 = vld [vmem:[#allocation5 + $0x158] sm:$0xff]  ;;  %v860_v53 = vld [vmem:[#allocation5 + $0x150] sm:$0xff]  ;;  %v851_v54 = vld [vmem:[#allocation5 + $0x108] sm:$0xff] }
  0x1e   :  { %520 = vmatpush.bf16.msra.mxu3 %v846_v15  ;;  %v859_v55 = vld [vmem:[#allocation5 + $0x148] sm:$0xff]  ;;  %v68_v56 = vld [vmem:[#allocation2 + $0x10] sm:$0xff]  ;;  %v850_v59 = vld [vmem:[#allocation5 + $0x100] sm:$0xff] }
  0x1f   :  { %482 = vmatpush.bf16.msra.mxu0 %v821_v16  ;;  %v176_v57 = vunpack.c.l.b16 %v68_v56  ;;  %v177_v58 = vunpack.c.h.b16 %v68_v56  ;;  %v858_v60 = vld [vmem:[#allocation5 + $0x140] sm:$0xff]  ;;  %v572_v63 = vld [vmem:[#allocation7 + $0x78] sm:$0xff]  ;;  %v571_v0 = vld [vmem:[#allocation7 + $0x70] sm:$0xff] }
  0x20   :  { %495 = vmatpush.bf16.msra.mxu1 %v829_v17  ;;  %v570_v1 = vld [vmem:[#allocation7 + $0x68] sm:$0xff]  ;;  %v569_v2 = vld [vmem:[#allocation7 + $0x60] sm:$0xff]  ;;  %v568_v3 = vld [vmem:[#allocation7 + $0x58] sm:$0xff] }
  0x21   :  { %508 = vmatpush.bf16.msra.mxu2 %v837_v18  ;;  %v182_v61 = vpack.c.b16 %v176_v57, %v176_v57  ;;  %v183_v62 = vpack.c.b16 %v177_v58, %v177_v58  ;;  %v567_v4 = vld [vmem:[#allocation7 + $0x50] sm:$0xff]  ;;  %v566_v5 = vld [vmem:[#allocation7 + $0x48] sm:$0xff]  ;;  %v565_v6 = vld [vmem:[#allocation7 + $0x40] sm:$0xff] }
  0x22   :  { %521 = vmatpush.bf16.msra.mxu3 %v845_v19  ;;  %v564_v7 = vld [vmem:[#allocation7 + $0x38] sm:$0xff]  ;;  %v563_v8 = vld [vmem:[#allocation7 + $0x30] sm:$0xff]  ;;  %v562_v9 = vld [vmem:[#allocation7 + $0x28] sm:$0xff] }
  0x23   :  { %483 = vmatpush.bf16.msra.mxu0 %v820_v20  ;;  %v561_v10 = vld [vmem:[#allocation7 + $0x20] sm:$0xff]  ;;  %v560_v11 = vld [vmem:[#allocation7 + $0x18] sm:$0xff]  ;;  %v559_v12 = vld [vmem:[#allocation7 + $0x10] sm:$0xff] }
  0x24   :  { %496 = vmatpush.bf16.msra.mxu1 %v828_v21  ;;  %v558_v15 = vld [vmem:[#allocation7 + $0x8] sm:$0xff]  ;;  %v557_v16 = vld [vmem:[#allocation7] sm:$0xff] }
  0x25   :  { %509 = vmatpush.bf16.msra.mxu2 %v836_v22  ;;  %v874_v21 = vld [vmem:[%s1040_s2] ss:$0 sm:$0xff]  ;;  %s989_s2 = smov [#allocation8]  }
  0x26   :  { %522 = vmatpush.bf16.msra.mxu3 %v844_v23  ;;  %s613_s13 = sshll.u32 %s989_s2, 4  ;;  %s614_s13 = int_to_ptr.vmem [resolvable:$true] %s613_s13 }
  0x27   :  { %484 = vmatpush.bf16.msra.mxu0 %v819_v24 }
  0x28   :  { %497 = vmatpush.bf16.msra.mxu1 %v827_v25 }
  0x29   :  { %510 = vmatpush.bf16.msra.mxu2 %v835_v27 }
  0x2a   :  { %523 = vmatpush.bf16.msra.mxu3 %v843_v29 }
  0x2b   :  { %485 = vmatpush.bf16.msra.mxu0 %v818_v32 }
  0x2c   :  { %498 = vmatpush.bf16.msra.mxu1 %v826_v33 }
  0x2d   :  { %511 = vmatpush.bf16.msra.mxu2 %v834_v36 }
  0x2e   :  { %486 = vmatmul.bf16.vlgmr.msra.gmra.mxu0 %v178_v38  ;;  %524 = vmatpush.bf16.msra.mxu3 %v842_v41 }
  0x2f   :  { %530 = vmatpush.bf16.msrb.mxu0 %v857_v34  ;;  %499 = vmatmul.bf16.vlgmr.msra.gmra.mxu1 %v179_v39 }
  0x30   :  { %543 = vmatpush.bf16.msrb.mxu1 %v865_v35  ;;  %512 = vmatmul.bf16.vlgmr.msra.gmra.mxu2 %v180_v44  ;;  %v875_v35 = vld [vmem:[%s1042_s4] ss:$0 sm:$0xff] }
  0x31   :  { %525 = vmatmul.bf16.vlgmr.msra.gmra.mxu3 %v181_v45  ;;  %577 = vmatpush.msrb.mxu2 %v572_v63 }
  0x33   :  { %531 = vmatpush.bf16.msrb.mxu0 %v856_v42  ;;  %578 = vmatpush.msrb.mxu2 %v571_v0 }
  0x34   :  { %544 = vmatpush.bf16.msrb.mxu1 %v864_v43 }
  0x35   :  { %579 = vmatpush.msrb.mxu2 %v570_v1 }
  0x37   :  { %532 = vmatpush.bf16.msrb.mxu0 %v855_v46  ;;  %580 = vmatpush.msrb.mxu2 %v569_v2 }
  0x38   :  { %545 = vmatpush.bf16.msrb.mxu1 %v863_v47 }
  0x39   :  { %581 = vmatpush.msrb.mxu2 %v568_v3 }
  0x3b   :  { %533 = vmatpush.bf16.msrb.mxu0 %v854_v48  ;;  %582 = vmatpush.msrb.mxu2 %v567_v4 }
  0x3c   :  { %546 = vmatpush.bf16.msrb.mxu1 %v862_v49 }
  0x3d   :  { %583 = vmatpush.msrb.mxu2 %v566_v5 }
  0x3f   :  { %534 = vmatpush.bf16.msrb.mxu0 %v853_v50  ;;  %584 = vmatpush.msrb.mxu2 %v565_v6 }
  0x40   :  { %547 = vmatpush.bf16.msrb.mxu1 %v861_v51 }
  0x41   :  { %585 = vmatpush.msrb.mxu2 %v564_v7 }
  0x43   :  { %535 = vmatpush.bf16.msrb.mxu0 %v852_v52  ;;  %586 = vmatpush.msrb.mxu2 %v563_v8 }
  0x44   :  { %548 = vmatpush.bf16.msrb.mxu1 %v860_v53 }
  0x45   :  { %587 = vmatpush.msrb.mxu2 %v562_v9 }
  0x47   :  { %536 = vmatpush.bf16.msrb.mxu0 %v851_v54  ;;  %588 = vmatpush.msrb.mxu2 %v561_v10 }
  0x48   :  { %549 = vmatpush.bf16.msrb.mxu1 %v859_v55 }
  0x49   :  { %589 = vmatpush.msrb.mxu2 %v560_v11 }
  0x4b   :  { %537 = vmatpush.bf16.msrb.mxu0 %v850_v59  ;;  %590 = vmatpush.msrb.mxu2 %v559_v12 }
  0x4c   :  { %550 = vmatpush.bf16.msrb.mxu1 %v858_v60 }
  0x4d   :  { %591 = vmatpush.msrb.mxu2 %v558_v15 }
  0x4e   :  { %538 = vmatmul.bf16.vlgmr.msrb.gmra.mxu0 %v182_v61 }
  0x4f   :  { %551 = vmatmul.bf16.vlgmr.msrb.gmra.mxu1 %v183_v62  ;;  %592 = vmatpush.msrb.mxu2 %v557_v16 }
  0xab   :  { %v487_v13 = vpop.f32.mrf.mxu0 }
  0xac   :  { %v500_v14 = vpop.f32.mrf.mxu1  ;;  %v488_v22 = vadd.f32 %v874_v21, %v487_v13 }
  0xae   :  { %v501_v25 = vadd.f32 %v500_v14, %v488_v22 }
  0xb3   :  { %v489_v17 = vpop.f32.mrf.mxu0  ;;  %v513_v19 = vpop.f32.mrf.mxu2 }
  0xb4   :  { %v502_v18 = vpop.f32.mrf.mxu1  ;;  %v526_v20 = vpop.f32.mrf.mxu3  ;;  %v514_v26 = vadd.f32 %v513_v19, %v501_v25 }
  0xb6   :  { %v527_v27 = vadd.f32 %v526_v20, %v514_v26 }
  0xbb   :  { %v515_v23 = vpop.f32.mrf.mxu2 }
  0xbc   :  { %v528_v24 = vpop.f32.mrf.mxu3 }
  0xcb   :  { %v539_v28 = vpop.f32.mrf.mxu0 }
  0xcc   :  { %v552_v29 = vpop.f32.mrf.mxu1  ;;  %v540_v30 = vadd.f32 %v539_v28, %v527_v27 }
  0xce   :  { %v553_v31 = vadd.f32 %v552_v29, %v540_v30 }
  0xd0   :  { %v556_v32 = vmax.f32 %v553_v31, 0.0 }
  0xd2   :  { %593 = vmatmul.f32.vlgmr.msrb.gmra.mxu2 %v556_v32 }
  0xd3   :  { %v541_v33 = vpop.f32.mrf.mxu0 }
  0xd4   :  { %v554_v34 = vpop.f32.mrf.mxu1 }
 0x155   :  { %v594_v36 = vpop.f32.mrf.mxu2 }
 0x156   :  { %v595_v37 = vadd.f32 %v875_v35, %v594_v36 }
 0x158   :  { %597 = vmax.xlane.f32.xlu0 %v595_v37 }
 0x1cb   :  { %v598_v38 = vpop.xlane.xlu0 %597 }
 0x1cc   :  { %v599_v39 = vsub.f32 %v595_v37, %v598_v38 }
 0x1ce   :  { %v600_v40 = vmul.f32 1.442695, %v599_v39 }
 0x1d0   :  { %876 = vpow2.f32 %v600_v40 }
 0x1d6   :  { %v877_v41 = vpop.eup %876 }
 0x1d7   :  { %602 = vadd.xlane.f32.xlu0 %v877_v41 }
 0x24a   :  { %v603_v42 = vpop.xlane.xlu0 %602 }
 0x24b   :  { %878 = vlog2.f32 %v603_v42 }
 0x251   :  { %v879_v43 = vpop.eup %878 }
 0x252   :  { %v605_v44 = vmul.f32 0.6931472, %v879_v43 }
 0x254   :  { %v606_v45 = vsub.f32 %v599_v39, %v605_v44 }
 0x256   :  { %607 = vst [vmem:[#allocation8] sm:$0xff] %v606_v45 }
 0x257   :  { %618 = dma.vmem_to_hbm [thread:$0]  %s614_s13, 128, %s616_s16, [#allocation4]  }
 0x258   :  { %980 = dma.done.wait [#allocation4], 128  }
 0x259   :  { %981 = vsyncadd [#allocation4], 4294967168 }
 0x25a   :  { %623 = vsyncpa [#allocation3], 1 }
 0x25b   :  { %624 = vsyncpa [#allocation6], 1 }
 0x25c   :  { %625 = vsyncpa [#allocation4], 1 }

</bundles_post_ra>
